<compile_context>
chip_gen: v7x
topology: tpu7x:2x2x1
jax: 0.10.0
libtpu: 0.0.40
codegen_flags: <defaults>
</compile_context>

<pallas_src>
import functools

import jax
import jax.numpy as jnp
import numpy as np
from jax import lax
from jax.experimental import pallas as pl
from jax.experimental.pallas import tpu as pltpu

MATMUL_DTYPE = jnp.bfloat16   # native MXU rate on v5e/v6e/v7x; f32 accumulation kept.


# ----------------------------- kernel ---------------------------------------

def _mm(a, w):
    """MXU matmul with f32 accumulation; activations cast to the weight dtype."""
    return jnp.dot(a.astype(w.dtype), w, preferred_element_type=jnp.float32)


def _breathing_kernel(x_ref,
                      w1_ref, w2_ref, w3_ref,
                      f1w_ref, f2w_ref, f3w_ref,
                      vec_ref, o_ref, *, vec_widths):
    """Whole forward pass on one batch tile; everything stays (B, features) flat."""
    a = x_ref[...]                                       # (B, L*Cin), f32, lane-flat

    def vec(i):                                          # folded BN shift / fc bias
        return vec_ref[i:i + 1, :vec_widths[i]]          # (1, n_i), f32

    # conv{1,2,3}: Toeplitz matmul (BN scale folded into W, padding folded into rows)
    # + shift + ReLU; MaxPool1d(2) = max(even-position half, odd-position half)
    # because the weight columns were pre-permuted in the wrapper.
    for i, w_ref in enumerate((w1_ref, w2_ref, w3_ref)):
        y = jnp.maximum(_mm(a, w_ref[...]) + vec(i), 0.0)    # (B, 2*Lp*Cout)
        half = y.shape[-1] // 2
        a = jnp.maximum(y[:, :half], y[:, half:])            # (B, Lp*Cout), feat = l*C + c

    # After conv3 the flat feature order is l*128 + c, matching the reordered fc1 rows.
    h = jnp.maximum(_mm(a, f1w_ref[...]) + vec(3), 0.0)
    # TODO(synk): Dropout(0.4) is identity in eval mode; training-mode dropout omitted.
    h = jnp.maximum(_mm(h, f2w_ref[...]) + vec(4), 0.0)
    o_ref[...] = _mm(h, f3w_ref[...]) + vec(5)               # (B, NC_pad), lane-dense


# ----------------------------- weight preprocessing --------------------------

def _round_up(a, m):
    return ((a + m - 1) // m) * m


def _fold_bn(conv_b, gamma, beta, mean, var, eps=1e-5):
    """Eval-mode BatchNorm as a per-channel (scale, shift); conv bias folded in."""
    scale = gamma / jnp.sqrt(var + eps)
    shift = (conv_b - mean) * scale + beta
    return scale.astype(jnp.float32), shift.astype(jnp.float32)


def _toeplitz_conv_weight(w, scale, l_in):
    """Conv1d(K, stride=1, pad=K//2) + folded BN scale as a single matmul weight.

    Returns (M, Lp) with M of shape (l_in*Cin, 2*Lp*Cout) such that
        y[b, j] = sum_{l,c} x[b, l*Cin + c] * M[l*Cin + c, j]
    where columns j in [0, Lp*Cout) are conv positions lo = 0,2,...,2Lp-2 and
    columns j in [Lp*Cout, 2*Lp*Cout) are lo = 1,3,...,2Lp-1 (channels-last within
    each half, j = lp*Cout + co).  Zero padding is folded in (rows only for valid
    input positions) and the conv position dropped by MaxPool1d(2) (odd output
    lengths) is never materialized.
    """
    Cout, Cin, K = w.shape
    pad = K // 2
    lo_len = l_in + 2 * pad - K + 1                  # PyTorch conv output length
    lp = lo_len // 2                                 # MaxPool1d(2) output length
    ws = (w * scale[:, None, None]).astype(jnp.float32)   # fold BN scale into weights

    def col_block(lo):                               # columns for one conv position
        blk = jnp.zeros((l_in, Cin, Cout), jnp.float32)
        l0, l1 = max(0, lo - pad), min(l_in, lo - pad + K)
        if l1 > l0:
            taps = ws[:, :, l0 - lo + pad:l1 - lo + pad]    # tap k = l - lo + pad
            blk = blk.at[l0:l1].set(jnp.transpose(taps, (2, 1, 0)))
        return blk.reshape(l_in * Cin, Cout)

    even = [col_block(2 * i) for i in range(lp)]
    odd = [col_block(2 * i + 1) for i in range(lp)]
    return jnp.concatenate(even + odd, axis=1), lp


# ----------------------------- glue / wrapper --------------------------------

def breathing_cnn_forward(x_ncl, p, tile_b=None, matmul_dtype=MATMUL_DTYPE):
    """x_ncl: (N, Cin, L) float32 (PyTorch NCL).  Returns (N, num_classes)."""
    N, Cin, L = x_ncl.shape
    num_classes = p['fc3_w'].shape[0]
    H1 = p['fc1_w'].shape[0]
    C1, C2, C3 = p['conv1_w'].shape[0], p['conv2_w'].shape[0], p['conv3_w'].shape[0]

    # ---- fold BN + build Toeplitz conv matrices (scale folded, pool-permuted cols) --
    s1, t1 = _fold_bn(p['conv1_b'], p['bn1_g'], p['bn1_b'], p['bn1_m'], p['bn1_v'])
    s2, t2 = _fold_bn(p['conv2_b'], p['bn2_g'], p['bn2_b'], p['bn2_m'], p['bn2_v'])
    s3, t3 = _fold_bn(p['conv3_b'], p['bn3_g'], p['bn3_b'], p['bn3_m'], p['bn3_v'])

    w1, lp1 = _toeplitz_conv_weight(p['conv1_w'], s1, L)
    w2, lp2 = _toeplitz_conv_weight(p['conv2_w'], s2, lp1)
    w3, lp3 = _toeplitz_conv_weight(p['conv3_w'], s3, lp2)
    Lf = lp3
    assert p['fc1_w'].shape[1] == Lf * C3, (p['fc1_w'].shape, Lf, C3)

    # ---- fc weights (fc1 rows reordered: PyTorch flattens (c, l); kernel uses (l, c))
    f1w = p['fc1_w'].reshape(H1, C3, Lf).transpose(2, 1, 0).reshape(Lf * C3, H1)
    f2w = p['fc2_w'].T
    nc_pad = _round_up(num_classes, 128)             # lane-dense output block
    f3w = jnp.zeros((p['fc3_w'].shape[1], nc_pad), jnp.float32).at[:, :num_classes].set(
        p['fc3_w'].T)
    w1, w2, w3, f1w, f2w, f3w = (a.astype(matmul_dtype)
                                 for a in (w1, w2, w3, f1w, f2w, f3w))

    # ---- coalesce all shift/bias vectors into one (6, Wmax) f32 slab ----------------
    shift1 = jnp.tile(t1[None, :], (1, 2 * lp1))      # col = lo*Cout + co (lo-invariant)
    shift2 = jnp.tile(t2[None, :], (1, 2 * lp2))
    shift3 = jnp.tile(t3[None, :], (1, 2 * lp3))
    f1b = p['fc1_b'][None, :].astype(jnp.float32)
    f2b = p['fc2_b'][None, :].astype(jnp.float32)
    f3b = jnp.zeros((1, nc_pad), jnp.float32).at[:, :num_classes].set(p['fc3_b'][None, :])
    vecs = (shift1, shift2, shift3, f1b, f2b, f3b)
    vec_widths = tuple(int(v.shape[1]) for v in vecs)
    wmax = max(vec_widths)
    vec_slab = jnp.concatenate(
        [jnp.pad(v, ((0, 0), (0, wmax - v.shape[1]))) for v in vecs], axis=0)

    # ---- batch tiling ----------------------------------------------------------------
    if tile_b is None:
        tile_b = min(256, _round_up(max(N, 1), 8))
        if 16 <= N <= 256:
            # keep >=2 grid steps so the "parallel" batch axis can shard across both
            # TensorCores on v7x (harmless on single-core v5e/v6e).
            tile_b = _round_up((N + 1) // 2, 8)
    tile_b = max(8, _round_up(tile_b, 8))             # sublane-divisibility guard
    n_pad = _round_up(N, tile_b)

    # NCL -> NLC -> lane-flat (N_pad, L*Cin); feature index = l*Cin + c.
    # (Zero-padded batch rows do pick up the BN shift and flow through; they are
    #  sliced off below, so this is wasted-but-correct work only.)
    x = jnp.transpose(x_ncl, (0, 2, 1)).reshape(N, L * Cin).astype(jnp.float32)
    x = jnp.pad(x, ((0, n_pad - N), (0, 0)))

    weights = (w1, w2, w3, f1w, f2w, f3w, vec_slab)
    kernel = functools.partial(_breathing_kernel, vec_widths=vec_widths)

    out = pl.pallas_call(
        kernel,
        out_shape=jax.ShapeDtypeStruct((n_pad, nc_pad), jnp.float32),
        grid=(n_pad // tile_b,),
        in_specs=[pl.BlockSpec((tile_b, L * Cin), lambda n: (n, 0))]
                 + [pl.BlockSpec(w.shape, lambda n: (0, 0)) for w in weights],
        out_specs=pl.BlockSpec((tile_b, nc_pad), lambda n: (n, 0)),
        compiler_params=pltpu.CompilerParams(
            dimension_semantics=("parallel",),
            vmem_limit_bytes=32 * 1024 * 1024),
    )(x, *weights)
    return out[:N, :num_classes]


# ----------------------------- params & reference ----------------------------

def init_params(key, input_channels=1, sequence_length=16, num_classes=2):
    conv_output_size = (sequence_length // 2 // 2 // 2) * 128
    keys = iter(jax.random.split(key, 32))

    def nrm(shape, scale=0.05):
        return scale * jax.random.normal(next(keys), shape, dtype=jnp.float32)

    return dict(
        conv1_w=nrm((32, input_channels, 20)), conv1_b=nrm((32,)),
        bn1_g=1.0 + nrm((32,)), bn1_b=nrm((32,)),
        bn1_m=nrm((32,)), bn1_v=1.0 + jnp.abs(nrm((32,))),
        conv2_w=nrm((64, 32, 20)), conv2_b=nrm((64,)),
        bn2_g=1.0 + nrm((64,)), bn2_b=nrm((64,)),
        bn2_m=nrm((64,)), bn2_v=1.0 + jnp.abs(nrm((64,))),
        conv3_w=nrm((128, 64, 10)), conv3_b=nrm((128,)),
        bn3_g=1.0 + nrm((128,)), bn3_b=nrm((128,)),
        bn3_m=nrm((128,)), bn3_v=1.0 + jnp.abs(nrm((128,))),
        fc1_w=nrm((256, conv_output_size)), fc1_b=nrm((256,)),
        fc2_w=nrm((128, 256)), fc2_b=nrm((128,)),
        fc3_w=nrm((num_classes, 128)), fc3_b=nrm((num_classes,)),
    )


def torch_reference(x_ncl, p, eps=1e-5):
    """Pure-JAX, f32/HIGHEST re-implementation of BreathingCNN.forward (eval mode)."""
    hp = lax.Precision.HIGHEST

    def conv1d(x, w, b):
        pad = w.shape[2] // 2
        y = lax.conv_general_dilated(
            x, w, window_strides=(1,), padding=[(pad, pad)],
            dimension_numbers=('NCH', 'OIH', 'NCH'), precision=hp)
        return y + b[None, :, None]

    def bn(x, g, be, m, v):
        return ((x - m[None, :, None]) / jnp.sqrt(v[None, :, None] + eps)
                * g[None, :, None] + be[None, :, None])

    def pool(x):
        N, C, L = x.shape
        Lp = L // 2
        return x[:, :, :2 * Lp].reshape(N, C, Lp, 2).max(axis=-1)

    x = pool(jax.nn.relu(bn(conv1d(x_ncl, p['conv1_w'], p['conv1_b']),
                            p['bn1_g'], p['bn1_b'], p['bn1_m'], p['bn1_v'])))
    x = pool(jax.nn.relu(bn(conv1d(x, p['conv2_w'], p['conv2_b']),
                            p['bn2_g'], p['bn2_b'], p['bn2_m'], p['bn2_v'])))
    x = pool(jax.nn.relu(bn(conv1d(x, p['conv3_w'], p['conv3_b']),
                            p['bn3_g'], p['bn3_b'], p['bn3_m'], p['bn3_v'])))
    x = x.reshape(x.shape[0], -1)                                   # PyTorch NCL flatten
    x = jax.nn.relu(jnp.dot(x, p['fc1_w'].T, precision=hp) + p['fc1_b'])
    x = jax.nn.relu(jnp.dot(x, p['fc2_w'].T, precision=hp) + p['fc2_b'])
    return jnp.dot(x, p['fc3_w'].T, precision=hp) + p['fc3_b']


# ----------------------------- main ------------------------------------------

if __name__ == "__main__":
    key = jax.random.PRNGKey(0)
    kp, kx = jax.random.split(key)

    # Small shapes consistent with the module: batch=2, channels=1, seq=16
    # (seq=16 keeps the module's conv_output_size arithmetic self-consistent).
    N, Cin, L, NUM_CLASSES = 2, 1, 16, 2
    params = init_params(kp, input_channels=Cin, sequence_length=L,
                         num_classes=NUM_CLASSES)
    x = jax.random.normal(kx, (N, Cin, L), dtype=jnp.float32)

    out = jax.block_until_ready(breathing_cnn_forward(x, params))

    # Tolerances loosened for the bf16 matmul path (f32 accumulation; reference is f32).
    ref = torch_reference(x, params)
    np.testing.assert_allclose(np.asarray(out), np.asarray(ref),
                               rtol=5e-2, atol=2e-2)
    print("KERNEL_OK")
</pallas_src>

<mosaic_0001>
module attributes {stable_mosaic.version = 11 : i64} {
  func.func @_breathing_kernel(%arg0: i32, %arg1: memref<8x16xf32, #tpu.memory_space<vmem>>, %arg2: memref<16x512xbf16, #tpu.memory_space<vmem>>, %arg3: memref<256x512xbf16, #tpu.memory_space<vmem>>, %arg4: memref<256x512xbf16, #tpu.memory_space<vmem>>, %arg5: memref<256x256xbf16, #tpu.memory_space<vmem>>, %arg6: memref<256x128xbf16, #tpu.memory_space<vmem>>, %arg7: memref<128x128xbf16, #tpu.memory_space<vmem>>, %arg8: memref<6x512xf32, #tpu.memory_space<vmem>>, %arg9: memref<8x128xf32, #tpu.memory_space<vmem>>) attributes {dimension_semantics = [#tpu.dimension_semantics<parallel>], iteration_bounds = array<i64: 1>, scalar_prefetch = 0 : i64, scratch_operands = 0 : i64, tpu.core_type = #tpu.core_type<tc>, window_params = [{transform_indices = @transform_0, window_bounds = array<i64: 8, 16>}, {pipeline_mode = #tpu.pipeline_mode<synchronous>, transform_indices = @transform_1, window_bounds = array<i64: 16, 512>}, {pipeline_mode = #tpu.pipeline_mode<synchronous>, transform_indices = @transform_2, window_bounds = array<i64: 256, 512>}, {pipeline_mode = #tpu.pipeline_mode<synchronous>, transform_indices = @transform_3, window_bounds = array<i64: 256, 512>}, {pipeline_mode = #tpu.pipeline_mode<synchronous>, transform_indices = @transform_4, window_bounds = array<i64: 256, 256>}, {pipeline_mode = #tpu.pipeline_mode<synchronous>, transform_indices = @transform_5, window_bounds = array<i64: 256, 128>}, {pipeline_mode = #tpu.pipeline_mode<synchronous>, transform_indices = @transform_6, window_bounds = array<i64: 128, 128>}, {pipeline_mode = #tpu.pipeline_mode<synchronous>, transform_indices = @transform_7, window_bounds = array<i64: 6, 512>}, {transform_indices = @transform_8, window_bounds = array<i64: 8, 128>}]} {
    %c0 = arith.constant 0 : index
    %c0_0 = arith.constant 0 : index
    %0 = vector.load %arg1[%c0, %c0_0] : memref<8x16xf32, #tpu.memory_space<vmem>>, vector<8x16xf32>
    %c0_1 = arith.constant 0 : index
    %c0_2 = arith.constant 0 : index
    %1 = vector.load %arg2[%c0_1, %c0_2] : memref<16x512xbf16, #tpu.memory_space<vmem>>, vector<16x512xbf16>
    %2 = arith.truncf %0 : vector<8x16xf32> to vector<8x16xbf16>
    %cst = arith.constant dense<0.000000e+00> : vector<8x512xf32>
    %3 = tpu.matmul %2, %1, %cst {dimension_numbers = #tpu.dot_dimension_numbers<[1], [0], [0], [1], [0, 0, 1, 1], [], []>} : vector<8x16xbf16>, vector<16x512xbf16>, vector<8x512xf32> -> vector<8x512xf32>
    %c0_3 = arith.constant 0 : index
    %c0_4 = arith.constant 0 : index
    %4 = vector.load %arg8[%c0_3, %c0_4] : memref<6x512xf32, #tpu.memory_space<vmem>>, vector<1x512xf32>
    %5 = vector.broadcast %4 : vector<1x512xf32> to vector<8x512xf32>
    %6 = arith.addf %3, %5 : vector<8x512xf32>
    %cst_5 = arith.constant 0.000000e+00 : f32
    %7 = vector.broadcast %cst_5 : f32 to vector<8x512xf32>
    %8 = arith.maximumf %6, %7 : vector<8x512xf32>
    %9 = vector.extract_strided_slice %8 {offsets = [0, 0], sizes = [8, 256], strides = [1, 1]} : vector<8x512xf32> to vector<8x256xf32>
    %10 = vector.extract_strided_slice %8 {offsets = [0, 256], sizes = [8, 256], strides = [1, 1]} : vector<8x512xf32> to vector<8x256xf32>
    %11 = arith.maximumf %9, %10 : vector<8x256xf32>
    %c0_6 = arith.constant 0 : index
    %c0_7 = arith.constant 0 : index
    %12 = vector.load %arg3[%c0_6, %c0_7] : memref<256x512xbf16, #tpu.memory_space<vmem>>, vector<256x512xbf16>
    %13 = arith.truncf %11 : vector<8x256xf32> to vector<8x256xbf16>
    %cst_8 = arith.constant dense<0.000000e+00> : vector<8x512xf32>
    %14 = tpu.matmul %13, %12, %cst_8 {dimension_numbers = #tpu.dot_dimension_numbers<[1], [0], [0], [1], [0, 0, 1, 1], [], []>} : vector<8x256xbf16>, vector<256x512xbf16>, vector<8x512xf32> -> vector<8x512xf32>
    %c1 = arith.constant 1 : index
    %c0_9 = arith.constant 0 : index
    %15 = vector.load %arg8[%c1, %c0_9] : memref<6x512xf32, #tpu.memory_space<vmem>>, vector<1x512xf32>
    %16 = vector.broadcast %15 : vector<1x512xf32> to vector<8x512xf32>
    %17 = arith.addf %14, %16 : vector<8x512xf32>
    %cst_10 = arith.constant 0.000000e+00 : f32
    %18 = vector.broadcast %cst_10 : f32 to vector<8x512xf32>
    %19 = arith.maximumf %17, %18 : vector<8x512xf32>
    %20 = vector.extract_strided_slice %19 {offsets = [0, 0], sizes = [8, 256], strides = [1, 1]} : vector<8x512xf32> to vector<8x256xf32>
    %21 = vector.extract_strided_slice %19 {offsets = [0, 256], sizes = [8, 256], strides = [1, 1]} : vector<8x512xf32> to vector<8x256xf32>
    %22 = arith.maximumf %20, %21 : vector<8x256xf32>
    %c0_11 = arith.constant 0 : index
    %c0_12 = arith.constant 0 : index
    %23 = vector.load %arg4[%c0_11, %c0_12] : memref<256x512xbf16, #tpu.memory_space<vmem>>, vector<256x512xbf16>
    %24 = arith.truncf %22 : vector<8x256xf32> to vector<8x256xbf16>
    %cst_13 = arith.constant dense<0.000000e+00> : vector<8x512xf32>
    %25 = tpu.matmul %24, %23, %cst_13 {dimension_numbers = #tpu.dot_dimension_numbers<[1], [0], [0], [1], [0, 0, 1, 1], [], []>} : vector<8x256xbf16>, vector<256x512xbf16>, vector<8x512xf32> -> vector<8x512xf32>
    %c2 = arith.constant 2 : index
    %c0_14 = arith.constant 0 : index
    %26 = vector.load %arg8[%c2, %c0_14] : memref<6x512xf32, #tpu.memory_space<vmem>>, vector<1x512xf32>
    %27 = vector.broadcast %26 : vector<1x512xf32> to vector<8x512xf32>
    %28 = arith.addf %25, %27 : vector<8x512xf32>
    %cst_15 = arith.constant 0.000000e+00 : f32
    %29 = vector.broadcast %cst_15 : f32 to vector<8x512xf32>
    %30 = arith.maximumf %28, %29 : vector<8x512xf32>
    %31 = vector.extract_strided_slice %30 {offsets = [0, 0], sizes = [8, 256], strides = [1, 1]} : vector<8x512xf32> to vector<8x256xf32>
    %32 = vector.extract_strided_slice %30 {offsets = [0, 256], sizes = [8, 256], strides = [1, 1]} : vector<8x512xf32> to vector<8x256xf32>
    %33 = arith.maximumf %31, %32 : vector<8x256xf32>
    %c0_16 = arith.constant 0 : index
    %c0_17 = arith.constant 0 : index
    %34 = vector.load %arg5[%c0_16, %c0_17] : memref<256x256xbf16, #tpu.memory_space<vmem>>, vector<256x256xbf16>
    %35 = arith.truncf %33 : vector<8x256xf32> to vector<8x256xbf16>
    %cst_18 = arith.constant dense<0.000000e+00> : vector<8x256xf32>
    %36 = tpu.matmul %35, %34, %cst_18 {dimension_numbers = #tpu.dot_dimension_numbers<[1], [0], [0], [1], [0, 0, 1, 1], [], []>} : vector<8x256xbf16>, vector<256x256xbf16>, vector<8x256xf32> -> vector<8x256xf32>
    %c3 = arith.constant 3 : index
    %c0_19 = arith.constant 0 : index
    %37 = vector.load %arg8[%c3, %c0_19] : memref<6x512xf32, #tpu.memory_space<vmem>>, vector<1x256xf32>
    %38 = vector.broadcast %37 : vector<1x256xf32> to vector<8x256xf32>
    %39 = arith.addf %36, %38 : vector<8x256xf32>
    %cst_20 = arith.constant 0.000000e+00 : f32
    %40 = vector.broadcast %cst_20 : f32 to vector<8x256xf32>
    %41 = arith.maximumf %39, %40 : vector<8x256xf32>
    %c0_21 = arith.constant 0 : index
    %c0_22 = arith.constant 0 : index
    %42 = vector.load %arg6[%c0_21, %c0_22] : memref<256x128xbf16, #tpu.memory_space<vmem>>, vector<256x128xbf16>
    %43 = arith.truncf %41 : vector<8x256xf32> to vector<8x256xbf16>
    %cst_23 = arith.constant dense<0.000000e+00> : vector<8x128xf32>
    %44 = tpu.matmul %43, %42, %cst_23 {dimension_numbers = #tpu.dot_dimension_numbers<[1], [0], [0], [1], [0, 0, 1, 1], [], []>} : vector<8x256xbf16>, vector<256x128xbf16>, vector<8x128xf32> -> vector<8x128xf32>
    %c4 = arith.constant 4 : index
    %c0_24 = arith.constant 0 : index
    %45 = vector.load %arg8[%c4, %c0_24] : memref<6x512xf32, #tpu.memory_space<vmem>>, vector<1x128xf32>
    %46 = vector.broadcast %45 : vector<1x128xf32> to vector<8x128xf32>
    %47 = arith.addf %44, %46 : vector<8x128xf32>
    %cst_25 = arith.constant 0.000000e+00 : f32
    %48 = vector.broadcast %cst_25 : f32 to vector<8x128xf32>
    %49 = arith.maximumf %47, %48 : vector<8x128xf32>
    %c0_26 = arith.constant 0 : index
    %c0_27 = arith.constant 0 : index
    %50 = vector.load %arg7[%c0_26, %c0_27] : memref<128x128xbf16, #tpu.memory_space<vmem>>, vector<128x128xbf16>
    %51 = arith.truncf %49 : vector<8x128xf32> to vector<8x128xbf16>
    %cst_28 = arith.constant dense<0.000000e+00> : vector<8x128xf32>
    %52 = tpu.matmul %51, %50, %cst_28 {dimension_numbers = #tpu.dot_dimension_numbers<[1], [0], [0], [1], [0, 0, 1, 1], [], []>} : vector<8x128xbf16>, vector<128x128xbf16>, vector<8x128xf32> -> vector<8x128xf32>
    %c5 = arith.constant 5 : index
    %c0_29 = arith.constant 0 : index
    %53 = vector.load %arg8[%c5, %c0_29] : memref<6x512xf32, #tpu.memory_space<vmem>>, vector<1x128xf32>
    %54 = vector.broadcast %53 : vector<1x128xf32> to vector<8x128xf32>
    %55 = arith.addf %52, %54 : vector<8x128xf32>
    %c0_30 = arith.constant 0 : index
    %c0_31 = arith.constant 0 : index
    %56 = vector.load %arg9[%c0_30, %c0_31] : memref<8x128xf32, #tpu.memory_space<vmem>>, vector<8x128xf32>
    tpu.vector_store %arg9[%c0_30, %c0_31], %55 {strides = array<i32>} : memref<8x128xf32, #tpu.memory_space<vmem>>, vector<8x128xf32>,
    return
  }
  func.func @transform_0(%arg0: i32) -> (i32, i32) {
    %c0_i32 = arith.constant 0 : i32
    %c0_i32_0 = arith.constant 0 : i32
    return %arg0, %c0_i32 : i32, i32
  }
  func.func @transform_1(%arg0: i32) -> (i32, i32) {
    %c0_i32 = arith.constant 0 : i32
    %c0_i32_0 = arith.constant 0 : i32
    %c0_i32_1 = arith.constant 0 : i32
    return %c0_i32, %c0_i32_0 : i32, i32
  }
  func.func @transform_2(%arg0: i32) -> (i32, i32) {
    %c0_i32 = arith.constant 0 : i32
    %c0_i32_0 = arith.constant 0 : i32
    %c0_i32_1 = arith.constant 0 : i32
    return %c0_i32, %c0_i32_0 : i32, i32
  }
  func.func @transform_3(%arg0: i32) -> (i32, i32) {
    %c0_i32 = arith.constant 0 : i32
    %c0_i32_0 = arith.constant 0 : i32
    %c0_i32_1 = arith.constant 0 : i32
    return %c0_i32, %c0_i32_0 : i32, i32
  }
  func.func @transform_4(%arg0: i32) -> (i32, i32) {
    %c0_i32 = arith.constant 0 : i32
    %c0_i32_0 = arith.constant 0 : i32
    %c0_i32_1 = arith.constant 0 : i32
    return %c0_i32, %c0_i32_0 : i32, i32
  }
  func.func @transform_5(%arg0: i32) -> (i32, i32) {
    %c0_i32 = arith.constant 0 : i32
    %c0_i32_0 = arith.constant 0 : i32
    %c0_i32_1 = arith.constant 0 : i32
    return %c0_i32, %c0_i32_0 : i32, i32
  }
  func.func @transform_6(%arg0: i32) -> (i32, i32) {
    %c0_i32 = arith.constant 0 : i32
    %c0_i32_0 = arith.constant 0 : i32
    %c0_i32_1 = arith.constant 0 : i32
    return %c0_i32, %c0_i32_0 : i32, i32
  }
  func.func @transform_7(%arg0: i32) -> (i32, i32) {
    %c0_i32 = arith.constant 0 : i32
    %c0_i32_0 = arith.constant 0 : i32
    %c0_i32_1 = arith.constant 0 : i32
    return %c0_i32, %c0_i32_0 : i32, i32
  }
  func.func @transform_8(%arg0: i32) -> (i32, i32) {
    %c0_i32 = arith.constant 0 : i32
    %c0_i32_0 = arith.constant 0 : i32
    return %arg0, %c0_i32 : i32, i32
  }
}

</mosaic_0001>

<bundles_post_ra>
// kernel: tpu_custom_call.1
= control target key start
LH: loop header
LB: loop body
LE: loop exit
PB: predicated region body
PF: predicated region fallthrough
CT: control target
= control target key end

     0   :  { %13 = vsyncpa [#allocation3], 0  ;;  %s2765_s0 = inlined_call_operand.hbm [shape: f32[8,16], index: 0, kind: input, shape index: {}]   ;;  %s2766_s1 = inlined_call_operand.hbm [shape: bf16[16,512], index: 1, kind: input, shape index: {}]   ;;  %s2767_s2 = inlined_call_operand.hbm [shape: bf16[256,512], index: 2, kind: input, shape index: {}]   ;;  %s2768_s3 = inlined_call_operand.hbm [shape: bf16[256,512], index: 3, kind: input, shape index: {}]   ;;  %s2769_s4 = inlined_call_operand.hbm [shape: bf16[256,256], index: 4, kind: input, shape index: {}]   ;;  %s2770_s5 = inlined_call_operand.hbm [shape: bf16[256,128], index: 5, kind: input, shape index: {}]   ;;  %s2771_s6 = inlined_call_operand.hbm [shape: bf16[128,128], index: 6, kind: input, shape index: {}]   ;;  %s2772_s7 = inlined_call_operand.hbm [shape: f32[6,512], index: 7, kind: input, shape index: {}]   ;;  %s2773_s8 = inlined_call_operand.hbm [shape: f32[8,128], index: 8, kind: output, shape index: {}]  }
   0x1   :  { %14 = vsyncpa [#allocation6], 0 }
   0x2   :  { %15 = vsyncpa [#allocation9], 0 }
   0x3   :  { %16 = vsyncpa [#allocation12], 0 }
   0x4   :  { %17 = vsyncpa [#allocation15], 0 }
   0x5   :  { %18 = vsyncpa [#allocation4], 0  ;;  %s2557_s27 = smov [#allocation5]   ;;  %s2347_s9 = scalar_lea.hbm %s2766_s1, 512 }
   0x6   :  { %s34_s28 = sshll.u32 %s2557_s27, 4  ;;  %p2348_p0 = scmp.ne.s32.totalorder %s2766_s1, %s2347_s9  ;;  %s35_s28 = int_to_ptr.vmem [resolvable:$true] %s34_s28 }
   0x7   :  { %p2351_p1 = scmp.lt.u32.totalorder %s2347_s9, %s2766_s1 }
   0x9   :  { %p2353_p2 = pnand %p2351_p1, %p2348_p0 }
   0xb   :  { %2356 = shalt.err (!%p2353_p2)
}
   0xc   :  { %s2357_s14 = scalar_lea.vmem %s35_s28, 512  ;;  %p2362_p4 = scmp.lt.s32.totalorder %s35_s28, %s35_s28 }
   0xd   :  { %p2358_p3 = scmp.ne.s32.totalorder %s35_s28, %s2357_s14  ;;  %p2363_p5 = scmp.lt.s32.totalorder %s2357_s14, %s2357_s14 }
   0xf   :  { %p2364_p6 = por %p2363_p5, %p2362_p4 }
  0x11   :  { %p2365_p7 = pnand %p2364_p6, %p2358_p3 }
  0x13   :  { %2368 = shalt.err (!%p2365_p7)
}
  0x14   :  { %s2558_s15 = smov 256   ;;  %s2559_s16 = smov 16  }
  0x15   :  { %40 = dma.hbm_to_vmem [thread:$0]  %s2766_s1, 512, %s35_s28, [#allocation6], %s2558_s15, %s2558_s15, %s2559_s16  }
  0x16   :  { %s2560_s19 = smov [#allocation8]   ;;  %s2561_s21 = smov [#allocation11]  }
  0x17   :  { %s58_s20 = sshll.u32 %s2560_s19, 4  ;;  %s82_s22 = sshll.u32 %s2561_s21, 4  ;;  %s59_s20 = int_to_ptr.vmem [resolvable:$true] %s58_s20  ;;  %s83_s22 = int_to_ptr.vmem [resolvable:$true] %s82_s22 }
  0x18   :  { %s2369_s25 = scalar_lea.hbm %s2768_s3, 8192 }
  0x19   :  { %p2370_p8 = scmp.ne.s32.totalorder %s2768_s3, %s2369_s25  ;;  %p2373_p9 = scmp.lt.u32.totalorder %s2369_s25, %s2768_s3 }
  0x1b   :  { %p2375_p10 = pnand %p2373_p9, %p2370_p8 }
  0x1d   :  { %2378 = shalt.err (!%p2375_p10)
}
  0x1e   :  { %s2379_s1 = scalar_lea.vmem %s59_s20, 8192  ;;  %p2384_p12 = scmp.lt.s32.totalorder %s59_s20, %s59_s20 }
  0x1f   :  { %p2380_p11 = scmp.ne.s32.totalorder %s59_s20, %s2379_s1  ;;  %p2385_p13 = scmp.lt.s32.totalorder %s2379_s1, %s2379_s1 }
  0x21   :  { %p2386_p0 = por %p2385_p13, %p2384_p12 }
  0x23   :  { %p2387_p1 = pnand %p2386_p0, %p2380_p11 }
  0x25   :  { %2390 = shalt.err (!%p2387_p1)
}
  0x26   :  { %64 = dma.hbm_to_vmem [thread:$0]  %s2768_s3, 8192, %s59_s20, [#allocation9], %s2558_s15, %s2558_s15, %s2559_s16  }
  0x27   :  { %s2391_s12 = scalar_lea.hbm %s2770_s5, 2048 }
  0x28   :  { %p2392_p2 = scmp.ne.s32.totalorder %s2770_s5, %s2391_s12  ;;  %p2395_p3 = scmp.lt.u32.totalorder %s2391_s12, %s2770_s5 }
  0x2a   :  { %p2397_p4 = pnand %p2395_p3, %p2392_p2 }
  0x2c   :  { %2400 = shalt.err (!%p2397_p4)
}
  0x2d   :  { %s2401_s19 = scalar_lea.vmem %s83_s22, 2048  ;;  %p2406_p6 = scmp.lt.s32.totalorder %s83_s22, %s83_s22 }
  0x2e   :  { %p2402_p5 = scmp.ne.s32.totalorder %s83_s22, %s2401_s19  ;;  %p2407_p7 = scmp.lt.s32.totalorder %s2401_s19, %s2401_s19 }
  0x30   :  { %p2408_p8 = por %p2407_p7, %p2406_p6 }
  0x32   :  { %p2409_p9 = pnand %p2408_p8, %p2402_p5 }
  0x34   :  { %2412 = shalt.err (!%p2409_p9)
}
  0x35   :  { %s2562_s3 = smov 64   ;;  %s2563_s20 = smov 4  }
  0x36   :  { %88 = dma.hbm_to_vmem [thread:$0]  %s2770_s5, 2048, %s83_s22, [#allocation12], %s2562_s3, %s2562_s3, %s2563_s20  }
  0x37   :  { %s2564_s24 = smov [#allocation2]   ;;  %s2565_s26 = smov [#allocation7]  }
  0x38   :  { %s25_s25 = sshll.u32 %s2564_s24, 4  ;;  %s46_s27 = sshll.u32 %s2565_s26, 4  ;;  %s26_s25 = int_to_ptr.vmem [resolvable:$true] %s25_s25  ;;  %s47_s27 = int_to_ptr.vmem [resolvable:$true] %s46_s27 }
  0x39   :  { %s2413_s1 = scalar_lea.hbm %s2765_s0, 128 }
  0x3a   :  { %p2414_p10 = scmp.ne.s32.totalorder %s2765_s0, %s2413_s1  ;;  %p2417_p11 = scmp.lt.u32.totalorder %s2413_s1, %s2765_s0 }
  0x3c   :  { %p2419_p12 = pnand %p2417_p11, %p2414_p10 }
  0x3e   :  { %2422 = shalt.err (!%p2419_p12)
}
  0x3f   :  { %s2423_s5 = scalar_lea.vmem %s26_s25, 128  ;;  %p2428_p0 = scmp.lt.s32.totalorder %s26_s25, %s26_s25 }
  0x40   :  { %p2424_p13 = scmp.ne.s32.totalorder %s26_s25, %s2423_s5  ;;  %p2429_p1 = scmp.lt.s32.totalorder %s2423_s5, %s2423_s5 }
  0x42   :  { %p2430_p2 = por %p2429_p1, %p2428_p0 }
  0x44   :  { %p2431_p3 = pnand %p2430_p2, %p2424_p13 }
  0x46   :  { %2434 = shalt.err (!%p2431_p3)
}
  0x47   :  { %28 = dma.hbm_to_vmem [thread:$0]  %s2765_s0, 128, %s26_s25, [#allocation3]  }
  0x48   :  { %s2435_s17 = scalar_lea.hbm %s2767_s2, 8192 }
  0x49   :  { %p2436_p4 = scmp.ne.s32.totalorder %s2767_s2, %s2435_s17  ;;  %p2439_p5 = scmp.lt.u32.totalorder %s2435_s17, %s2767_s2 }
  0x4b   :  { %p2441_p6 = pnand %p2439_p5, %p2436_p4 }
  0x4d   :  { %2444 = shalt.err (!%p2441_p6)
}
  0x4e   :  { %s2445_s24 = scalar_lea.vmem %s47_s27, 8192  ;;  %p2450_p8 = scmp.lt.s32.totalorder %s47_s27, %s47_s27 }
  0x4f   :  { %p2446_p7 = scmp.ne.s32.totalorder %s47_s27, %s2445_s24  ;;  %p2451_p9 = scmp.lt.s32.totalorder %s2445_s24, %s2445_s24 }
  0x51   :  { %p2452_p10 = por %p2451_p9, %p2450_p8 }
  0x53   :  { %p2453_p11 = pnand %p2452_p10, %p2446_p7 }
  0x55   :  { %2456 = shalt.err (!%p2453_p11)
}
  0x56   :  { %52 = dma.hbm_to_vmem [thread:$0]  %s2767_s2, 8192, %s47_s27, [#allocation6], %s2558_s15, %s2558_s15, %s2559_s16  }
  0x57   :  { %s2566_s26 = smov [#allocation10]   ;;  %s2457_s28 = scalar_lea.hbm %s2769_s4, 4096 }
  0x58   :  { %s70_s29 = sshll.u32 %s2566_s26, 4  ;;  %p2458_p12 = scmp.ne.s32.totalorder %s2769_s4, %s2457_s28  ;;  %s71_s29 = int_to_ptr.vmem [resolvable:$true] %s70_s29 }
  0x59   :  { %p2461_p13 = scmp.lt.u32.totalorder %s2457_s28, %s2769_s4 }
  0x5b   :  { %p2463_p0 = pnand %p2461_p13, %p2458_p12 }
  0x5d   :  { %2466 = shalt.err (!%p2463_p0)
}
  0x5e   :  { %s2467_s22 = scalar_lea.vmem %s71_s29, 4096  ;;  %p2472_p2 = scmp.lt.s32.totalorder %s71_s29, %s71_s29 }
  0x5f   :  { %p2468_p1 = scmp.ne.s32.totalorder %s71_s29, %s2467_s22  ;;  %p2473_p3 = scmp.lt.s32.totalorder %s2467_s22, %s2467_s22 }
  0x61   :  { %p2474_p4 = por %p2473_p3, %p2472_p2 }
  0x63   :  { %p2475_p5 = pnand %p2474_p4, %p2468_p1 }
  0x65   :  { %2478 = shalt.err (!%p2475_p5)
}
  0x66   :  { %s2567_s2 = smov 128   ;;  %s2568_s15 = smov 8  }
  0x67   :  { %76 = dma.hbm_to_vmem [thread:$0]  %s2769_s4, 4096, %s71_s29, [#allocation9], %s2567_s2, %s2567_s2, %s2568_s15  }
  0x68   :  { %s2569_s12 = smov [#allocation13]   ;;  %s2570_s14 = smov [#allocation14]  }
  0x69   :  { %s94_s13 = sshll.u32 %s2569_s12, 4  ;;  %s107_s17 = sshll.u32 %s2570_s14, 4  ;;  %s95_s13 = int_to_ptr.vmem [resolvable:$true] %s94_s13  ;;  %s108_s17 = int_to_ptr.vmem [resolvable:$true] %s107_s17 }
  0x6a   :  { %s2479_s21 = scalar_lea.hbm %s2771_s6, 1024 }
  0x6b   :  { %p2480_p6 = scmp.ne.s32.totalorder %s2771_s6, %s2479_s21  ;;  %p2483_p7 = scmp.lt.u32.totalorder %s2479_s21, %s2771_s6 }
  0x6d   :  { %p2485_p8 = pnand %p2483_p7, %p2480_p6 }
  0x6f   :  { %2488 = shalt.err (!%p2485_p8)
}
  0x70   :  { %s2489_s4 = scalar_lea.vmem %s95_s13, 1024  ;;  %p2494_p10 = scmp.lt.s32.totalorder %s95_s13, %s95_s13 }
  0x71   :  { %p2490_p9 = scmp.ne.s32.totalorder %s95_s13, %s2489_s4  ;;  %p2495_p11 = scmp.lt.s32.totalorder %s2489_s4, %s2489_s4 }
  0x73   :  { %p2496_p12 = por %p2495_p11, %p2494_p10 }
  0x75   :  { %p2497_p13 = pnand %p2496_p12, %p2490_p9 }
  0x77   :  { %2500 = shalt.err (!%p2497_p13)
}
  0x78   :  { %100 = dma.hbm_to_vmem [thread:$0]  %s2771_s6, 1024, %s95_s13, [#allocation12], %s2562_s3, %s2562_s3, %s2563_s20  }
  0x79   :  { %s2501_s28 = scalar_lea.hbm %s2772_s7, 512 }
  0x7a   :  { %p2502_p0 = scmp.ne.s32.totalorder %s2772_s7, %s2501_s28  ;;  %p2505_p1 = scmp.lt.u32.totalorder %s2501_s28, %s2772_s7 }
  0x7c   :  { %p2507_p2 = pnand %p2505_p1, %p2502_p0 }
  0x7e   :  { %2510 = shalt.err (!%p2507_p2)
}
  0x7f   :  { %s2511_s22 = scalar_lea.vmem %s108_s17, 512  ;;  %p2516_p4 = scmp.lt.s32.totalorder %s108_s17, %s108_s17 }
  0x80   :  { %p2512_p3 = scmp.ne.s32.totalorder %s108_s17, %s2511_s22  ;;  %p2517_p5 = scmp.lt.s32.totalorder %s2511_s22, %s2511_s22 }
  0x82   :  { %p2518_p6 = por %p2517_p5, %p2516_p4 }
  0x84   :  { %p2519_p7 = pnand %p2518_p6, %p2512_p3 }
  0x86   :  { %2522 = shalt.err (!%p2519_p7)
}
  0x87   :  { %110 = dma.hbm_to_vmem [thread:$0]  %s2772_s7, 512, %s108_s17, [#allocation15]  }
  0x88   :  { %2545 = dma.done.wait [#allocation3], 128  }
  0x89   :  { %2546 = vsyncadd [#allocation3], 4294967168 }
  0x8a   :  { %2547 = dma.done.wait [#allocation6], 8704  }
  0x8b   :  { %2548 = vsyncadd [#allocation6], 4294958592 }
  0x8c   :  { %2549 = dma.done.wait [#allocation9], 12288  }
  0x8d   :  { %2550 = vsyncadd [#allocation9], 4294955008 }
  0x8e   :  { %2551 = dma.done.wait [#allocation12], 3072  }
  0x8f   :  { %2552 = vsyncadd [#allocation12], 4294964224 }
  0x90   :  { %2553 = dma.done.wait [#allocation15], 512  }
  0x91   :  { %2554 = vsyncadd [#allocation15], 4294966784  ;;  %v2571_v0 = vmov 0   ;;  %v2077_v1 = vld [vmem:[#allocation5 + $0x4] ss:$16 sps:$4 sm:$0xff]   ;;  %v136_v5 = vld [vmem:[#allocation2] sm:$0xff] }
  0x92   :  { %220 = vmatprep.mubr.bf16.mxu0 %v2571_v0  ;;  %261 = vmatprep.mubr.bf16.mxu1 %v2571_v0  ;;  %v2079_v2 = vld [vmem:[#allocation5 + $0xc] ss:$16 sps:$4 sm:$0xff]   ;;  %v2081_v3 = vld [vmem:[#allocation5] ss:$16 sps:$4 sm:$0xff]   ;;  %v2082_v4 = vld [vmem:[#allocation5 + $0x8] ss:$16 sps:$4 sm:$0xff]   ;;  %v141_v6 = vpack.c.bf16 %v136_v5, %v136_v5 }
  0x93   :  { %188 = vmatprep.subr.bf16.mxu0 %v2077_v1  ;;  %229 = vmatprep.subr.bf16.mxu1 %v2079_v2  ;;  %v2083_v7 = vld [vmem:[#allocation7] ss:$16 sps:$4 sm:$0xff]   ;;  %vm184_vm0 = vcmask 130048   ;;  %v2085_v8 = vld [vmem:[#allocation7 + $0x4] ss:$16 sps:$4 sm:$0xff]   ;;  %vm2573_vm1 = vmmov 0  }
  0x94   :  { %189 = vmatpush1.bf16.msra.mxu0 %v2081_v3  ;;  %230 = vmatpush1.bf16.msra.mxu1 %v2082_v4  ;;  %v2086_v9 = vld [vmem:[#allocation7 + $0x8] ss:$16 sps:$4 sm:$0xff]   ;;  %v2088_v10 = vld [vmem:[#allocation7 + $0xc] ss:$16 sps:$4 sm:$0xff]   ;;  %v2091_v11 = vld [vmem:[#allocation7 + $0x24] ss:$16 sps:$4 sm:$0xff]  }
  0x95   :  { %685 = vmatprep.subr.bf16.mxu0 %v2085_v8  ;;  %v2089_v12 = vld [vmem:[#allocation7 + $0x20] ss:$16 sps:$4 sm:$0xff]   ;;  %726 = vmatprep.subr.bf16.mxu1 %v2088_v10  ;;  %v2094_v13 = vld [vmem:[#allocation7 + $0x2c] ss:$16 sps:$4 sm:$0xff]   ;;  %v2092_v14 = vld [vmem:[#allocation7 + $0x28] ss:$16 sps:$4 sm:$0xff]  }
  0x96   :  { %v2097_v15 = vld [vmem:[#allocation7 + $0x44] ss:$16 sps:$4 sm:$0xff]   ;;  %v2100_v16 = vld [vmem:[#allocation7 + $0x4c] ss:$16 sps:$4 sm:$0xff]   ;;  %v2095_v17 = vld [vmem:[#allocation7 + $0x40] ss:$16 sps:$4 sm:$0xff]  }
  0x97   :  { %1822 = vmatmul.mubr.msk.bf16.vlgmr.msra.gmra.mrb[0].mxu0 %vm184_vm0, %v141_v6  ;;  %1823 = vmatmul.mubr.msk.bf16.vlgmr.msra.gmra.mrb[0].mxu1 %vm184_vm0, %v141_v6  ;;  %v2098_v18 = vld [vmem:[#allocation7 + $0x48] ss:$16 sps:$4 sm:$0xff]   ;;  %v2103_v19 = vld [vmem:[#allocation7 + $0x64] ss:$16 sps:$4 sm:$0xff]   ;;  %v2106_v20 = vld [vmem:[#allocation7 + $0x6c] ss:$16 sps:$4 sm:$0xff]  }
  0x98   :  { %686 = vmatpush1.bf16.msra.mxu0 %v2083_v7  ;;  %727 = vmatpush1.bf16.msra.mxu1 %v2086_v9  ;;  %v2101_v21 = vld [vmem:[#allocation7 + $0x60] ss:$16 sps:$4 sm:$0xff]   ;;  %v2104_v22 = vld [vmem:[#allocation7 + $0x68] ss:$16 sps:$4 sm:$0xff]   ;;  %v2109_v23 = vld [vmem:[#allocation7 + $0x84] ss:$16 sps:$4 sm:$0xff]   ;;  %v144_v9 = vlaneseq }
  0x99   :  { %687 = vmatprep.subr.bf16.mxu0 %v2091_v11  ;;  %728 = vmatprep.subr.bf16.mxu1 %v2094_v13  ;;  %v2112_v24 = vld [vmem:[#allocation7 + $0x8c] ss:$16 sps:$4 sm:$0xff]   ;;  %v2107_v25 = vld [vmem:[#allocation7 + $0x80] ss:$16 sps:$4 sm:$0xff]   ;;  %v2110_v26 = vld [vmem:[#allocation7 + $0x88] ss:$16 sps:$4 sm:$0xff]  }
  0x9a   :  { %v2115_v27 = vld [vmem:[#allocation7 + $0xa4] ss:$16 sps:$4 sm:$0xff]   ;;  %v2118_v28 = vld [vmem:[#allocation7 + $0xac] ss:$16 sps:$4 sm:$0xff]   ;;  %v2113_v29 = vld [vmem:[#allocation7 + $0xa0] ss:$16 sps:$4 sm:$0xff]  }
  0x9b   :  { %v2116_v30 = vld [vmem:[#allocation7 + $0xa8] ss:$16 sps:$4 sm:$0xff]   ;;  %v2121_v31 = vld [vmem:[#allocation7 + $0xc4] ss:$16 sps:$4 sm:$0xff]   ;;  %v2124_v32 = vld [vmem:[#allocation7 + $0xcc] ss:$16 sps:$4 sm:$0xff]  }
  0x9c   :  { %688 = vmatpush1.bf16.msra.mxu0 %v2089_v12  ;;  %729 = vmatpush1.bf16.msra.mxu1 %v2092_v14  ;;  %v2119_v33 = vld [vmem:[#allocation7 + $0xc0] ss:$16 sps:$4 sm:$0xff]   ;;  %v2122_v34 = vld [vmem:[#allocation7 + $0xc8] ss:$16 sps:$4 sm:$0xff]   ;;  %v2127_v35 = vld [vmem:[#allocation7 + $0xe4] ss:$16 sps:$4 sm:$0xff]  }
  0x9d   :  { %689 = vmatprep.subr.bf16.mxu0 %v2097_v15  ;;  %730 = vmatprep.subr.bf16.mxu1 %v2100_v16  ;;  %v2130_v36 = vld [vmem:[#allocation7 + $0xec] ss:$16 sps:$4 sm:$0xff]   ;;  %v2125_v37 = vld [vmem:[#allocation7 + $0xe0] ss:$16 sps:$4 sm:$0xff]   ;;  %v2128_v38 = vld [vmem:[#allocation7 + $0xe8] ss:$16 sps:$4 sm:$0xff]  }
  0x9e   :  { %v2133_v39 = vld [vmem:[#allocation7 + $0x104] ss:$16 sps:$4 sm:$0xff]   ;;  %v2136_v40 = vld [vmem:[#allocation7 + $0x10c] ss:$16 sps:$4 sm:$0xff]   ;;  %v2131_v41 = vld [vmem:[#allocation7 + $0x100] ss:$16 sps:$4 sm:$0xff]  }
  0x9f   :  { %v2134_v42 = vld [vmem:[#allocation7 + $0x108] ss:$16 sps:$4 sm:$0xff]   ;;  %v2139_v43 = vld [vmem:[#allocation7 + $0x124] ss:$16 sps:$4 sm:$0xff]   ;;  %v2137_v44 = vld [vmem:[#allocation7 + $0x120] ss:$16 sps:$4 sm:$0xff]  }
  0xa0   :  { %690 = vmatpush1.bf16.msra.mxu0 %v2095_v17  ;;  %731 = vmatpush1.bf16.msra.mxu1 %v2098_v18  ;;  %v2142_v45 = vld [vmem:[#allocation7 + $0x12c] ss:$16 sps:$4 sm:$0xff]   ;;  %v2140_v46 = vld [vmem:[#allocation7 + $0x128] ss:$16 sps:$4 sm:$0xff]   ;;  %v2145_v47 = vld [vmem:[#allocation7 + $0x144] ss:$16 sps:$4 sm:$0xff]  }
  0xa1   :  { %691 = vmatprep.subr.bf16.mxu0 %v2103_v19  ;;  %732 = vmatprep.subr.bf16.mxu1 %v2106_v20  ;;  %v2148_v48 = vld [vmem:[#allocation7 + $0x14c] ss:$16 sps:$4 sm:$0xff]   ;;  %v2143_v49 = vld [vmem:[#allocation7 + $0x140] ss:$16 sps:$4 sm:$0xff]   ;;  %v2146_v50 = vld [vmem:[#allocation7 + $0x148] ss:$16 sps:$4 sm:$0xff]  }
  0xa2   :  { %v2151_v51 = vld [vmem:[#allocation7 + $0x164] ss:$16 sps:$4 sm:$0xff]   ;;  %v2154_v52 = vld [vmem:[#allocation7 + $0x16c] ss:$16 sps:$4 sm:$0xff]   ;;  %v2149_v53 = vld [vmem:[#allocation7 + $0x160] ss:$16 sps:$4 sm:$0xff]  }
  0xa3   :  { %v2152_v54 = vld [vmem:[#allocation7 + $0x168] ss:$16 sps:$4 sm:$0xff]   ;;  %v2157_v55 = vld [vmem:[#allocation7 + $0x184] ss:$16 sps:$4 sm:$0xff]   ;;  %v2160_v56 = vld [vmem:[#allocation7 + $0x18c] ss:$16 sps:$4 sm:$0xff]  }
  0xa4   :  { %692 = vmatpush1.bf16.msra.mxu0 %v2101_v21  ;;  %733 = vmatpush1.bf16.msra.mxu1 %v2104_v22  ;;  %v2155_v57 = vld [vmem:[#allocation7 + $0x180] ss:$16 sps:$4 sm:$0xff]   ;;  %v2158_v58 = vld [vmem:[#allocation7 + $0x188] ss:$16 sps:$4 sm:$0xff]   ;;  %v2163_v59 = vld [vmem:[#allocation7 + $0x1a4] ss:$16 sps:$4 sm:$0xff]  }
  0xa5   :  { %693 = vmatprep.subr.bf16.mxu0 %v2109_v23  ;;  %734 = vmatprep.subr.bf16.mxu1 %v2112_v24  ;;  %v2166_v60 = vld [vmem:[#allocation7 + $0x1ac] ss:$16 sps:$4 sm:$0xff]   ;;  %v2161_v61 = vld [vmem:[#allocation7 + $0x1a0] ss:$16 sps:$4 sm:$0xff]   ;;  %v2164_v62 = vld [vmem:[#allocation7 + $0x1a8] ss:$16 sps:$4 sm:$0xff]  }
  0xa6   :  { %v2169_v63 = vld [vmem:[#allocation7 + $0x1c4] ss:$16 sps:$4 sm:$0xff]   ;;  %v2172_v0 = vld [vmem:[#allocation7 + $0x1cc] ss:$16 sps:$4 sm:$0xff]   ;;  %v2167_v1 = vld [vmem:[#allocation7 + $0x1c0] ss:$16 sps:$4 sm:$0xff]  }
  0xa7   :  { %v2170_v2 = vld [vmem:[#allocation7 + $0x1c8] ss:$16 sps:$4 sm:$0xff]   ;;  %v2175_v3 = vld [vmem:[#allocation7 + $0x1e4] ss:$16 sps:$4 sm:$0xff]   ;;  %v2178_v4 = vld [vmem:[#allocation7 + $0x1ec] ss:$16 sps:$4 sm:$0xff]  }
  0xa8   :  { %694 = vmatpush1.bf16.msra.mxu0 %v2107_v25  ;;  %735 = vmatpush1.bf16.msra.mxu1 %v2110_v26  ;;  %v2173_v5 = vld [vmem:[#allocation7 + $0x1e0] ss:$16 sps:$4 sm:$0xff]   ;;  %v2176_v6 = vld [vmem:[#allocation7 + $0x1e8] ss:$16 sps:$4 sm:$0xff]   ;;  %v2181_v7 = vld [vmem:[#allocation8 + $0x4] ss:$16 sps:$4 sm:$0xff]  }
  0xa9   :  { %695 = vmatprep.subr.bf16.mxu0 %v2115_v27  ;;  %736 = vmatprep.subr.bf16.mxu1 %v2118_v28  ;;  %v2184_v8 = vld [vmem:[#allocation8 + $0xc] ss:$16 sps:$4 sm:$0xff]   ;;  %v145_v10 = vshrl.u32 %v144_v9, 7  ;;  %v142_v13 = vld [vmem:[#allocation14] ss:$8 sm:$0xf] }
  0xaa   :  { %v2230_v9 = vld [vmem:[#allocation8 + $0x108] ss:$16 sps:$4 sm:$0xff]   ;;  %s2574_s7 = smov [#allocation16]  }
  0xab   :  { %v2731_v11 = vsub.s32 0, %v145_v10  ;;  %v2733_v12 = vsub.s32 2, %v145_v10  ;;  %v2735_v14 = vsub.s32 1, %v145_v10  ;;  %v2737_v15 = vsub.s32 3, %v145_v10  ;;  %v2235_v10 = vld [vmem:[#allocation8 + $0x124] ss:$16 sps:$4 sm:$0xff]  }
  0xac   :  { %696 = vmatpush1.bf16.msra.mxu0 %v2113_v29  ;;  %737 = vmatpush1.bf16.msra.mxu1 %v2116_v30  ;;  %s1805_s20 = sshll.u32 %s2574_s7, 4  ;;  %s1806_s20 = int_to_ptr.vmem [resolvable:$true] %s1805_s20 }
  0xad   :  { %697 = vmatprep.subr.bf16.mxu0 %v2121_v31  ;;  %738 = vmatprep.subr.bf16.mxu1 %v2124_v32  ;;  %v147_v16 = vrot.slane %v142_v13, %v2731_v11  ;;  %v155_v17 = vrot.slane %v142_v13, %v2733_v12  ;;  %v151_v18 = vrot.slane %v142_v13, %v2735_v14  ;;  %s2523_s2 = scalar_lea.vmem %s1806_s20, 128  ;;  %p2528_p9 = scmp.lt.s32.totalorder %s1806_s20, %s1806_s20 }
  0xae   :  { %v159_v19 = vrot.slane %v142_v13, %v2737_v15  ;;  %v2238_v13 = vld [vmem:[#allocation8 + $0x12c] ss:$16 sps:$4 sm:$0xff]   ;;  %p2524_p8 = scmp.ne.s32.totalorder %s1806_s20, %s2523_s2  ;;  %p2529_p10 = scmp.lt.s32.totalorder %s2523_s2, %s2523_s2 }
  0xb0   :  { %698 = vmatpush1.bf16.msra.mxu0 %v2119_v33  ;;  %739 = vmatpush1.bf16.msra.mxu1 %v2122_v34  ;;  %p2530_p11 = por %p2529_p10, %p2528_p9 }
  0xb1   :  { %699 = vmatprep.subr.bf16.mxu0 %v2127_v35  ;;  %740 = vmatprep.subr.bf16.mxu1 %v2130_v36 }
  0xb2   :  { %p2531_p12 = pnand %p2530_p11, %p2524_p8 }
  0xb4   :  { %700 = vmatpush1.bf16.msra.mxu0 %v2125_v37  ;;  %741 = vmatpush1.bf16.msra.mxu1 %v2128_v38 }
  0xb5   :  { %701 = vmatprep.subr.bf16.mxu0 %v2133_v39  ;;  %742 = vmatprep.subr.bf16.mxu1 %v2136_v40  ;;  %v2179_v39 = vld [vmem:[#allocation8] ss:$16 sps:$4 sm:$0xff]   ;;  %v2182_v40 = vld [vmem:[#allocation8 + $0x8] ss:$16 sps:$4 sm:$0xff]  }
  0xb8   :  { %702 = vmatpush1.bf16.msra.mxu0 %v2131_v41  ;;  %743 = vmatpush1.bf16.msra.mxu1 %v2134_v42  ;;  %v2187_v42 = vld [vmem:[#allocation8 + $0x24] ss:$16 sps:$4 sm:$0xff]  }
  0xb9   :  { %703 = vmatprep.subr.bf16.mxu0 %v2139_v43  ;;  %744 = vmatprep.subr.bf16.mxu1 %v2142_v45  ;;  %v2190_v43 = vld [vmem:[#allocation8 + $0x2c] ss:$16 sps:$4 sm:$0xff]   ;;  %v2188_v45 = vld [vmem:[#allocation8 + $0x28] ss:$16 sps:$4 sm:$0xff]  }
  0xbc   :  { %704 = vmatpush1.bf16.msra.mxu0 %v2137_v44  ;;  %745 = vmatpush1.bf16.msra.mxu1 %v2140_v46  ;;  %v2185_v44 = vld [vmem:[#allocation8 + $0x20] ss:$16 sps:$4 sm:$0xff]   ;;  %v2193_v46 = vld [vmem:[#allocation8 + $0x44] ss:$16 sps:$4 sm:$0xff]  }
  0xbd   :  { %705 = vmatprep.subr.bf16.mxu0 %v2145_v47  ;;  %746 = vmatprep.subr.bf16.mxu1 %v2148_v48  ;;  %v2196_v47 = vld [vmem:[#allocation8 + $0x4c] ss:$16 sps:$4 sm:$0xff]   ;;  %v2191_v48 = vld [vmem:[#allocation8 + $0x40] ss:$16 sps:$4 sm:$0xff]  }
  0xc0   :  { %706 = vmatpush1.bf16.msra.mxu0 %v2143_v49  ;;  %747 = vmatpush1.bf16.msra.mxu1 %v2146_v50  ;;  %v2194_v49 = vld [vmem:[#allocation8 + $0x48] ss:$16 sps:$4 sm:$0xff]   ;;  %v2199_v50 = vld [vmem:[#allocation8 + $0x64] ss:$16 sps:$4 sm:$0xff]  }
  0xc1   :  { %707 = vmatprep.subr.bf16.mxu0 %v2151_v51  ;;  %748 = vmatprep.subr.bf16.mxu1 %v2154_v52  ;;  %v2202_v51 = vld [vmem:[#allocation8 + $0x6c] ss:$16 sps:$4 sm:$0xff]   ;;  %v2197_v52 = vld [vmem:[#allocation8 + $0x60] ss:$16 sps:$4 sm:$0xff]  }
  0xc4   :  { %708 = vmatpush1.bf16.msra.mxu0 %v2149_v53  ;;  %749 = vmatpush1.bf16.msra.mxu1 %v2152_v54  ;;  %v2200_v53 = vld [vmem:[#allocation8 + $0x68] ss:$16 sps:$4 sm:$0xff]   ;;  %v2205_v54 = vld [vmem:[#allocation8 + $0x84] ss:$16 sps:$4 sm:$0xff]  }
  0xc5   :  { %709 = vmatprep.subr.bf16.mxu0 %v2157_v55  ;;  %750 = vmatprep.subr.bf16.mxu1 %v2160_v56  ;;  %v2208_v55 = vld [vmem:[#allocation8 + $0x8c] ss:$16 sps:$4 sm:$0xff]   ;;  %v2203_v56 = vld [vmem:[#allocation8 + $0x80] ss:$16 sps:$4 sm:$0xff]  }
  0xc8   :  { %710 = vmatpush1.bf16.msra.mxu0 %v2155_v57  ;;  %751 = vmatpush1.bf16.msra.mxu1 %v2158_v58  ;;  %v2206_v57 = vld [vmem:[#allocation8 + $0x88] ss:$16 sps:$4 sm:$0xff]   ;;  %v2211_v58 = vld [vmem:[#allocation8 + $0xa4] ss:$16 sps:$4 sm:$0xff]  }
  0xc9   :  { %711 = vmatprep.subr.bf16.mxu0 %v2163_v59  ;;  %752 = vmatprep.subr.bf16.mxu1 %v2166_v60  ;;  %v2214_v59 = vld [vmem:[#allocation8 + $0xac] ss:$16 sps:$4 sm:$0xff]   ;;  %v2209_v60 = vld [vmem:[#allocation8 + $0xa0] ss:$16 sps:$4 sm:$0xff]  }
  0xcc   :  { %712 = vmatpush1.bf16.msra.mxu0 %v2161_v61  ;;  %753 = vmatpush1.bf16.msra.mxu1 %v2164_v62  ;;  %v2212_v61 = vld [vmem:[#allocation8 + $0xa8] ss:$16 sps:$4 sm:$0xff]   ;;  %v2217_v62 = vld [vmem:[#allocation8 + $0xc4] ss:$16 sps:$4 sm:$0xff]  }
  0xcd   :  { %713 = vmatprep.subr.bf16.mxu0 %v2169_v63  ;;  %754 = vmatprep.subr.bf16.mxu1 %v2172_v0  ;;  %v2220_v63 = vld [vmem:[#allocation8 + $0xcc] ss:$16 sps:$4 sm:$0xff]   ;;  %v2215_v0 = vld [vmem:[#allocation8 + $0xc0] ss:$16 sps:$4 sm:$0xff]  }
  0xd0   :  { %714 = vmatpush1.bf16.msra.mxu0 %v2167_v1  ;;  %755 = vmatpush1.bf16.msra.mxu1 %v2170_v2  ;;  %v2218_v1 = vld [vmem:[#allocation8 + $0xc8] ss:$16 sps:$4 sm:$0xff]   ;;  %v2223_v2 = vld [vmem:[#allocation8 + $0xe4] ss:$16 sps:$4 sm:$0xff]  }
  0xd1   :  { %715 = vmatprep.subr.bf16.mxu0 %v2175_v3  ;;  %756 = vmatprep.subr.bf16.mxu1 %v2178_v4  ;;  %v2226_v3 = vld [vmem:[#allocation8 + $0xec] ss:$16 sps:$4 sm:$0xff]   ;;  %v2221_v4 = vld [vmem:[#allocation8 + $0xe0] ss:$16 sps:$4 sm:$0xff]  }
  0xd4   :  { %716 = vmatpush1.bf16.msra.mxu0 %v2173_v5  ;;  %757 = vmatpush1.bf16.msra.mxu1 %v2176_v6  ;;  %v2224_v5 = vld [vmem:[#allocation8 + $0xe8] ss:$16 sps:$4 sm:$0xff]   ;;  %v2229_v6 = vld [vmem:[#allocation8 + $0x104] ss:$16 sps:$4 sm:$0xff]  }
  0xd5   :  { %1182 = vmatprep.subr.bf16.mxu0 %v2181_v7  ;;  %1223 = vmatprep.subr.bf16.mxu1 %v2184_v8  ;;  %v2232_v7 = vld [vmem:[#allocation8 + $0x10c] ss:$16 sps:$4 sm:$0xff]   ;;  %v2227_v8 = vld [vmem:[#allocation8 + $0x100] ss:$16 sps:$4 sm:$0xff]  }
 0x16a   :  { %v222_v20 = vpop.f32.mrb[0].mxu0  ;;  %v263_v21 = vpop.f32.mrb[0].mxu1 }
 0x16b   :  { %v223_v22 = vadd.f32 %v222_v20, %v147_v16  ;;  %v264_v23 = vadd.f32 %v263_v21, %v155_v17  ;;  %v224_v24 = vpop.f32.mrb[1].mxu0  ;;  %v265_v25 = vpop.f32.mrb[1].mxu1  ;;  %v2233_v16 = vld [vmem:[#allocation8 + $0x120] ss:$16 sps:$4 sm:$0xff]   ;;  %v2236_v17 = vld [vmem:[#allocation8 + $0x128] ss:$16 sps:$4 sm:$0xff]  }
 0x16c   :  { %v225_v26 = vadd.f32 %v224_v24, %v151_v18  ;;  %v266_v27 = vadd.f32 %v265_v25, %v159_v19  ;;  %v226_v28 = vpop.f32.mrb[2].mxu0  ;;  %v267_v29 = vpop.f32.mrb[2].mxu1  ;;  %v2241_v18 = vld [vmem:[#allocation8 + $0x144] ss:$16 sps:$4 sm:$0xff]   ;;  %v2244_v19 = vld [vmem:[#allocation8 + $0x14c] ss:$16 sps:$4 sm:$0xff]  }
 0x16d   :  { %v270_v30 = vmax.f32 %v223_v22, 0.0  ;;  %v272_v31 = vmax.f32 %v264_v23, 0.0  ;;  %v227_v32 = vpop.f32.mrb[3].mxu0  ;;  %v268_v33 = vpop.f32.mrb[3].mxu1  ;;  %v2239_v20 = vld [vmem:[#allocation8 + $0x140] ss:$16 sps:$4 sm:$0xff]  }
 0x16e   :  { %v271_v34 = vmax.f32 %v225_v26, 0.0  ;;  %v273_v35 = vmax.f32 %v266_v27, 0.0  ;;  %v2242_v21 = vld [vmem:[#allocation8 + $0x148] ss:$16 sps:$4 sm:$0xff]   ;;  %v2247_v22 = vld [vmem:[#allocation8 + $0x164] ss:$16 sps:$4 sm:$0xff]  }
 0x16f   :  { %v274_v36 = vmax.f32 %v270_v30, %v272_v31  ;;  %v2250_v23 = vld [vmem:[#allocation8 + $0x16c] ss:$16 sps:$4 sm:$0xff]   ;;  %v2245_v24 = vld [vmem:[#allocation8 + $0x160] ss:$16 sps:$4 sm:$0xff]   ;;  %v2248_v25 = vld [vmem:[#allocation8 + $0x168] ss:$16 sps:$4 sm:$0xff]  }
 0x170   :  { %v275_v37 = vmax.f32 %v271_v34, %v273_v35  ;;  %v2253_v26 = vld [vmem:[#allocation8 + $0x184] ss:$16 sps:$4 sm:$0xff]   ;;  %v2256_v27 = vld [vmem:[#allocation8 + $0x18c] ss:$16 sps:$4 sm:$0xff]   ;;  %v2251_v28 = vld [vmem:[#allocation8 + $0x180] ss:$16 sps:$4 sm:$0xff]  }
 0x171   :  { %v340_v41 = vpack.c.bf16 %v274_v36, %v274_v36  ;;  %v2254_v29 = vld [vmem:[#allocation8 + $0x188] ss:$16 sps:$4 sm:$0xff]   ;;  %v2259_v30 = vld [vmem:[#allocation8 + $0x1a4] ss:$16 sps:$4 sm:$0xff]   ;;  %v2262_v31 = vld [vmem:[#allocation8 + $0x1ac] ss:$16 sps:$4 sm:$0xff]  }
 0x172   :  { %v341_v38 = vpack.c.bf16 %v275_v37, %v275_v37  ;;  %v2257_v32 = vld [vmem:[#allocation8 + $0x1a0] ss:$16 sps:$4 sm:$0xff]   ;;  %v2260_v33 = vld [vmem:[#allocation8 + $0x1a8] ss:$16 sps:$4 sm:$0xff]   ;;  %v2265_v34 = vld [vmem:[#allocation8 + $0x1c4] ss:$16 sps:$4 sm:$0xff]  }
 0x173   :  { %v2268_v35 = vld [vmem:[#allocation8 + $0x1cc] ss:$16 sps:$4 sm:$0xff]   ;;  %v2263_v36 = vld [vmem:[#allocation8 + $0x1c0] ss:$16 sps:$4 sm:$0xff]   ;;  %v2266_v37 = vld [vmem:[#allocation8 + $0x1c8] ss:$16 sps:$4 sm:$0xff]  }
 0x174   :  { %717 = vmatprep.mubr.bf16.mxu0 %v341_v38  ;;  %758 = vmatprep.mubr.bf16.mxu1 %v341_v38  ;;  %v2271_v38 = vld [vmem:[#allocation8 + $0x1e4] ss:$16 sps:$4 sm:$0xff]  }
 0x175   :  { %718 = vmatmul.mubr.bf16.vlgmr.msra.gmra.mrb[4].mxu0 %v340_v41  ;;  %759 = vmatmul.mubr.bf16.vlgmr.msra.gmra.mrb[4].mxu1 %v340_v41  ;;  %v2272_v41 = vld [vmem:[#allocation8 + $0x1e8] ss:$16 sps:$4 sm:$0xff]  }
 0x176   :  { %1183 = vmatpush1.bf16.msra.mxu0 %v2179_v39  ;;  %1224 = vmatpush1.bf16.msra.mxu1 %v2182_v40  ;;  %v2274_v39 = vld [vmem:[#allocation8 + $0x1ec] ss:$16 sps:$4 sm:$0xff]   ;;  %v2269_v40 = vld [vmem:[#allocation8 + $0x1e0] ss:$16 sps:$4 sm:$0xff]  }
 0x177   :  { %1184 = vmatprep.subr.bf16.mxu0 %v2187_v42  ;;  %1225 = vmatprep.subr.bf16.mxu1 %v2190_v43  ;;  %v2277_v42 = vld [vmem:[#allocation10 + $0x4] ss:$8 sps:$4 sm:$0xff]   ;;  %v343_v43 = vld [vmem:[#allocation14 + $0x1] ss:$8 sm:$0xf] }
 0x17a   :  { %1185 = vmatpush1.bf16.msra.mxu0 %v2185_v44  ;;  %1226 = vmatpush1.bf16.msra.mxu1 %v2188_v45  ;;  %v348_v44 = vrot.slane %v343_v43, %v2731_v11  ;;  %v356_v45 = vrot.slane %v343_v43, %v2733_v12 }
 0x17b   :  { %1186 = vmatprep.subr.bf16.mxu0 %v2193_v46  ;;  %1227 = vmatprep.subr.bf16.mxu1 %v2196_v47  ;;  %v352_v46 = vrot.slane %v343_v43, %v2735_v14  ;;  %v360_v47 = vrot.slane %v343_v43, %v2737_v15  ;;  %v2327_v43 = vld [vmem:[#allocation11 + $0x50] sm:$0xff]  }
 0x17e   :  { %1187 = vmatpush1.bf16.msra.mxu0 %v2191_v48  ;;  %1228 = vmatpush1.bf16.msra.mxu1 %v2194_v49 }
 0x17f   :  { %1188 = vmatprep.subr.bf16.mxu0 %v2199_v50  ;;  %1229 = vmatprep.subr.bf16.mxu1 %v2202_v51 }
 0x182   :  { %1189 = vmatpush1.bf16.msra.mxu0 %v2197_v52  ;;  %1230 = vmatpush1.bf16.msra.mxu1 %v2200_v53 }
 0x183   :  { %1190 = vmatprep.subr.bf16.mxu0 %v2205_v54  ;;  %1231 = vmatprep.subr.bf16.mxu1 %v2208_v55 }
 0x186   :  { %1191 = vmatpush1.bf16.msra.mxu0 %v2203_v56  ;;  %1232 = vmatpush1.bf16.msra.mxu1 %v2206_v57 }
 0x187   :  { %1192 = vmatprep.subr.bf16.mxu0 %v2211_v58  ;;  %1233 = vmatprep.subr.bf16.mxu1 %v2214_v59 }
 0x18a   :  { %1193 = vmatpush1.bf16.msra.mxu0 %v2209_v60  ;;  %1234 = vmatpush1.bf16.msra.mxu1 %v2212_v61 }
 0x18b   :  { %1194 = vmatprep.subr.bf16.mxu0 %v2217_v62  ;;  %1235 = vmatprep.subr.bf16.mxu1 %v2220_v63 }
 0x18e   :  { %1195 = vmatpush1.bf16.msra.mxu0 %v2215_v0  ;;  %1236 = vmatpush1.bf16.msra.mxu1 %v2218_v1 }
 0x18f   :  { %1196 = vmatprep.subr.bf16.mxu0 %v2223_v2  ;;  %1237 = vmatprep.subr.bf16.mxu1 %v2226_v3  ;;  %v2275_v3 = vld [vmem:[#allocation10] ss:$8 sps:$4 sm:$0xff]  }
 0x192   :  { %1197 = vmatpush1.bf16.msra.mxu0 %v2221_v4  ;;  %1238 = vmatpush1.bf16.msra.mxu1 %v2224_v5  ;;  %v2280_v5 = vld [vmem:[#allocation10 + $0x14] ss:$8 sps:$4 sm:$0xff]  }
 0x193   :  { %1198 = vmatprep.subr.bf16.mxu0 %v2229_v6  ;;  %1239 = vmatprep.subr.bf16.mxu1 %v2232_v7  ;;  %v2278_v6 = vld [vmem:[#allocation10 + $0x10] ss:$8 sps:$4 sm:$0xff]   ;;  %v2283_v7 = vld [vmem:[#allocation10 + $0x24] ss:$8 sps:$4 sm:$0xff]  }
 0x196   :  { %1199 = vmatpush1.bf16.msra.mxu0 %v2227_v8  ;;  %1240 = vmatpush1.bf16.msra.mxu1 %v2230_v9  ;;  %v2281_v8 = vld [vmem:[#allocation10 + $0x20] ss:$8 sps:$4 sm:$0xff]   ;;  %v2286_v9 = vld [vmem:[#allocation10 + $0x34] ss:$8 sps:$4 sm:$0xff]  }
 0x197   :  { %1200 = vmatprep.subr.bf16.mxu0 %v2235_v10  ;;  %1241 = vmatprep.subr.bf16.mxu1 %v2238_v13  ;;  %v2284_v10 = vld [vmem:[#allocation10 + $0x30] ss:$8 sps:$4 sm:$0xff]   ;;  %v2289_v13 = vld [vmem:[#allocation10 + $0x44] ss:$8 sps:$4 sm:$0xff]  }
 0x19a   :  { %1201 = vmatpush1.bf16.msra.mxu0 %v2233_v16  ;;  %1242 = vmatpush1.bf16.msra.mxu1 %v2236_v17  ;;  %v2287_v16 = vld [vmem:[#allocation10 + $0x40] ss:$8 sps:$4 sm:$0xff]   ;;  %v2292_v17 = vld [vmem:[#allocation10 + $0x54] ss:$8 sps:$4 sm:$0xff]  }
 0x19b   :  { %1202 = vmatprep.subr.bf16.mxu0 %v2241_v18  ;;  %1243 = vmatprep.subr.bf16.mxu1 %v2244_v19  ;;  %v2290_v18 = vld [vmem:[#allocation10 + $0x50] ss:$8 sps:$4 sm:$0xff]   ;;  %v2295_v19 = vld [vmem:[#allocation10 + $0x64] ss:$8 sps:$4 sm:$0xff]  }
 0x19e   :  { %1203 = vmatpush1.bf16.msra.mxu0 %v2239_v20  ;;  %1244 = vmatpush1.bf16.msra.mxu1 %v2242_v21  ;;  %v2293_v20 = vld [vmem:[#allocation10 + $0x60] ss:$8 sps:$4 sm:$0xff]   ;;  %v2298_v21 = vld [vmem:[#allocation10 + $0x74] ss:$8 sps:$4 sm:$0xff]  }
 0x19f   :  { %1204 = vmatprep.subr.bf16.mxu0 %v2247_v22  ;;  %1245 = vmatprep.subr.bf16.mxu1 %v2250_v23  ;;  %v2296_v22 = vld [vmem:[#allocation10 + $0x70] ss:$8 sps:$4 sm:$0xff]   ;;  %v2301_v23 = vld [vmem:[#allocation10 + $0x84] ss:$8 sps:$4 sm:$0xff]  }
 0x1a2   :  { %1205 = vmatpush1.bf16.msra.mxu0 %v2245_v24  ;;  %1246 = vmatpush1.bf16.msra.mxu1 %v2248_v25  ;;  %v2299_v24 = vld [vmem:[#allocation10 + $0x80] ss:$8 sps:$4 sm:$0xff]   ;;  %v2304_v25 = vld [vmem:[#allocation10 + $0x94] ss:$8 sps:$4 sm:$0xff]  }
 0x1a3   :  { %1206 = vmatprep.subr.bf16.mxu0 %v2253_v26  ;;  %1247 = vmatprep.subr.bf16.mxu1 %v2256_v27  ;;  %v2302_v26 = vld [vmem:[#allocation10 + $0x90] ss:$8 sps:$4 sm:$0xff]   ;;  %v2307_v27 = vld [vmem:[#allocation10 + $0xa4] ss:$8 sps:$4 sm:$0xff]  }
 0x1a6   :  { %1207 = vmatpush1.bf16.msra.mxu0 %v2251_v28  ;;  %1248 = vmatpush1.bf16.msra.mxu1 %v2254_v29  ;;  %v2305_v28 = vld [vmem:[#allocation10 + $0xa0] ss:$8 sps:$4 sm:$0xff]   ;;  %v2310_v29 = vld [vmem:[#allocation10 + $0xb4] ss:$8 sps:$4 sm:$0xff]  }
 0x1a7   :  { %1208 = vmatprep.subr.bf16.mxu0 %v2259_v30  ;;  %1249 = vmatprep.subr.bf16.mxu1 %v2262_v31  ;;  %v2308_v30 = vld [vmem:[#allocation10 + $0xb0] ss:$8 sps:$4 sm:$0xff]   ;;  %v2313_v31 = vld [vmem:[#allocation10 + $0xc4] ss:$8 sps:$4 sm:$0xff]  }
 0x1aa   :  { %1209 = vmatpush1.bf16.msra.mxu0 %v2257_v32  ;;  %1250 = vmatpush1.bf16.msra.mxu1 %v2260_v33  ;;  %v2311_v32 = vld [vmem:[#allocation10 + $0xc0] ss:$8 sps:$4 sm:$0xff]   ;;  %v2316_v33 = vld [vmem:[#allocation10 + $0xd4] ss:$8 sps:$4 sm:$0xff]  }
 0x1ab   :  { %1210 = vmatprep.subr.bf16.mxu0 %v2265_v34  ;;  %1251 = vmatprep.subr.bf16.mxu1 %v2268_v35  ;;  %v2314_v34 = vld [vmem:[#allocation10 + $0xd0] ss:$8 sps:$4 sm:$0xff]   ;;  %v2319_v35 = vld [vmem:[#allocation10 + $0xe4] ss:$8 sps:$4 sm:$0xff]  }
 0x1ae   :  { %1211 = vmatpush1.bf16.msra.mxu0 %v2263_v36  ;;  %1252 = vmatpush1.bf16.msra.mxu1 %v2266_v37  ;;  %v2317_v36 = vld [vmem:[#allocation10 + $0xe0] ss:$8 sps:$4 sm:$0xff]   ;;  %v2322_v37 = vld [vmem:[#allocation10 + $0xf4] ss:$8 sps:$4 sm:$0xff]  }
 0x1af   :  { %1212 = vmatprep.subr.bf16.mxu0 %v2271_v38  ;;  %1253 = vmatprep.subr.bf16.mxu1 %v2274_v39  ;;  %v2320_v38 = vld [vmem:[#allocation10 + $0xf0] ss:$8 sps:$4 sm:$0xff]   ;;  %v2323_v39 = vld [vmem:[#allocation11 + $0x40] sm:$0xff]  }
 0x1b2   :  { %1213 = vmatpush1.bf16.msra.mxu0 %v2269_v40  ;;  %1254 = vmatpush1.bf16.msra.mxu1 %v2272_v41  ;;  %v2324_v40 = vld [vmem:[#allocation11] sm:$0xff]   ;;  %v2325_v41 = vld [vmem:[#allocation11 + $0x48] sm:$0xff]  }
 0x1b3   :  { %1477 = vmatprep.subr.bf16.mxu0 %v2277_v42  ;;  %2008 = vmatprep.subr.bf16.mxu1 %v2323_v39  ;;  %v2326_v42 = vld [vmem:[#allocation11 + $0x8] sm:$0xff]   ;;  %v1554_v39 = vld [vmem:[#allocation14 + $0x4] ss:$0 sm:$0xff] }
 0x248   :  { %v719_v48 = vpop.f32.mrb[4].mxu0  ;;  %v760_v49 = vpop.f32.mrb[4].mxu1 }
 0x249   :  { %v720_v50 = vadd.f32 %v719_v48, %v348_v44  ;;  %v761_v51 = vadd.f32 %v760_v49, %v356_v45  ;;  %v721_v52 = vpop.f32.mrb[5].mxu0  ;;  %v762_v53 = vpop.f32.mrb[5].mxu1  ;;  %v2328_v44 = vld [vmem:[#allocation11 + $0x10] sm:$0xff]   ;;  %v2329_v45 = vld [vmem:[#allocation11 + $0x58] sm:$0xff]   ;;  %v2332_v48 = vld [vmem:[#allocation11 + $0x20] sm:$0xff]  }
 0x24a   :  { %v722_v54 = vadd.f32 %v721_v52, %v352_v46  ;;  %v763_v55 = vadd.f32 %v762_v53, %v360_v47  ;;  %v723_v56 = vpop.f32.mrb[6].mxu0  ;;  %v764_v57 = vpop.f32.mrb[6].mxu1  ;;  %v2330_v46 = vld [vmem:[#allocation11 + $0x18] sm:$0xff]   ;;  %v2331_v47 = vld [vmem:[#allocation11 + $0x60] sm:$0xff]   ;;  %v2333_v49 = vld [vmem:[#allocation11 + $0x68] sm:$0xff]  }
 0x24b   :  { %v767_v58 = vmax.f32 %v720_v50, 0.0  ;;  %v769_v59 = vmax.f32 %v761_v51, 0.0  ;;  %v724_v60 = vpop.f32.mrb[7].mxu0  ;;  %v765_v61 = vpop.f32.mrb[7].mxu1  ;;  %v2334_v50 = vld [vmem:[#allocation11 + $0x28] sm:$0xff]  }
 0x24c   :  { %v768_v62 = vmax.f32 %v722_v54, 0.0  ;;  %v770_v63 = vmax.f32 %v763_v55, 0.0  ;;  %v840_v51 = vld [vmem:[#allocation14 + $0x2] ss:$8 sm:$0xf] }
 0x24d   :  { %v771_v0 = vmax.f32 %v767_v58, %v769_v59  ;;  %v845_v52 = vrot.slane %v840_v51, %v2731_v11  ;;  %v853_v53 = vrot.slane %v840_v51, %v2733_v12  ;;  %v849_v54 = vrot.slane %v840_v51, %v2735_v14 }
 0x24e   :  { %v772_v1 = vmax.f32 %v768_v62, %v770_v63  ;;  %v857_v55 = vrot.slane %v840_v51, %v2737_v15 }
 0x24f   :  { %v837_v4 = vpack.c.bf16 %v771_v0, %v771_v0 }
 0x250   :  { %v838_v2 = vpack.c.bf16 %v772_v1, %v772_v1 }
 0x252   :  { %1214 = vmatprep.mubr.bf16.mxu0 %v838_v2  ;;  %1255 = vmatprep.mubr.bf16.mxu1 %v838_v2 }
 0x253   :  { %1215 = vmatmul.mubr.bf16.vlgmr.msra.gmra.mrb[8].mxu0 %v837_v4  ;;  %1256 = vmatmul.mubr.bf16.vlgmr.msra.gmra.mrb[8].mxu1 %v837_v4 }
 0x254   :  { %1478 = vmatpush1.bf16.msra.mxu0 %v2275_v3  ;;  %2009 = vmatpush3.bf16.msra.mxu1 %v2324_v40 }
 0x255   :  { %1479 = vmatprep.subr.bf16.mxu0 %v2280_v5  ;;  %2010 = vmatprep.subr.bf16.mxu1 %v2325_v41 }
 0x258   :  { %1480 = vmatpush1.bf16.msra.mxu0 %v2278_v6  ;;  %2011 = vmatpush3.bf16.msra.mxu1 %v2326_v42 }
 0x259   :  { %1481 = vmatprep.subr.bf16.mxu0 %v2283_v7  ;;  %2012 = vmatprep.subr.bf16.mxu1 %v2327_v43 }
 0x25c   :  { %1482 = vmatpush1.bf16.msra.mxu0 %v2281_v8  ;;  %2013 = vmatpush3.bf16.msra.mxu1 %v2328_v44 }
 0x25d   :  { %1483 = vmatprep.subr.bf16.mxu0 %v2286_v9  ;;  %2014 = vmatprep.subr.bf16.mxu1 %v2329_v45 }
 0x260   :  { %1484 = vmatpush1.bf16.msra.mxu0 %v2284_v10  ;;  %2015 = vmatpush3.bf16.msra.mxu1 %v2330_v46  ;;  %v2335_v10 = vld [vmem:[#allocation11 + $0x70] sm:$0xff]  }
 0x261   :  { %1485 = vmatprep.subr.bf16.mxu0 %v2289_v13  ;;  %2016 = vmatprep.subr.bf16.mxu1 %v2331_v47  ;;  %v2336_v13 = vld [vmem:[#allocation11 + $0x30] sm:$0xff]   ;;  %v1709_v47 = vld [vmem:[#allocation14 + $0x5] ss:$0 sm:$0xff] }
 0x264   :  { %1486 = vmatpush1.bf16.msra.mxu0 %v2287_v16  ;;  %2017 = vmatpush3.bf16.msra.mxu1 %v2332_v48  ;;  %v2337_v16 = vld [vmem:[#allocation11 + $0x78] sm:$0xff]  }
 0x265   :  { %1487 = vmatprep.subr.bf16.mxu0 %v2292_v17  ;;  %2018 = vmatprep.subr.bf16.mxu1 %v2333_v49  ;;  %v2338_v17 = vld [vmem:[#allocation11 + $0x38] sm:$0xff]  }
 0x268   :  { %1488 = vmatpush1.bf16.msra.mxu0 %v2290_v18  ;;  %2019 = vmatpush3.bf16.msra.mxu1 %v2334_v50  ;;  %v2572_v18 = vmov 0.0  }
 0x269   :  { %1489 = vmatprep.subr.bf16.mxu0 %v2295_v19  ;;  %2020 = vmatprep.subr.bf16.mxu1 %v2335_v10  ;;  %v1305_v19 = vld [vmem:[#allocation14 + $0x3] ss:$8 sm:$0x3] }
 0x26c   :  { %1490 = vmatpush1.bf16.msra.mxu0 %v2293_v20  ;;  %2021 = vmatpush3.bf16.msra.mxu1 %v2336_v13  ;;  %v1310_v20 = vrot.slane %v1305_v19, %v2731_v11  ;;  %v2341_v11 = vld [vmem:[#allocation13 + $0x10] sm:$0xff]  }
 0x26d   :  { %1491 = vmatprep.subr.bf16.mxu0 %v2298_v21  ;;  %2022 = vmatprep.subr.bf16.mxu1 %v2337_v16  ;;  %v1314_v21 = vrot.slane %v1305_v19, %v2735_v14  ;;  %v2342_v14 = vld [vmem:[#allocation13 + $0x18] sm:$0xff]  }
 0x270   :  { %1492 = vmatpush1.bf16.msra.mxu0 %v2296_v22  ;;  %2023 = vmatpush3.bf16.msra.mxu1 %v2338_v17 }
 0x271   :  { %1493 = vmatprep.subr.bf16.mxu0 %v2301_v23  ;;  %2039 = vmatprep.subr.bf16.mxu1 %v2572_v18 }
 0x274   :  { %1494 = vmatpush1.bf16.msra.mxu0 %v2299_v24 }
 0x275   :  { %1495 = vmatprep.subr.bf16.mxu0 %v2304_v25 }
 0x278   :  { %1496 = vmatpush1.bf16.msra.mxu0 %v2302_v26 }
 0x279   :  { %1497 = vmatprep.subr.bf16.mxu0 %v2307_v27 }
 0x27c   :  { %1498 = vmatpush1.bf16.msra.mxu0 %v2305_v28 }
 0x27d   :  { %1499 = vmatprep.subr.bf16.mxu0 %v2310_v29 }
 0x280   :  { %1500 = vmatpush1.bf16.msra.mxu0 %v2308_v30 }
 0x281   :  { %1501 = vmatprep.subr.bf16.mxu0 %v2313_v31  ;;  %v2339_v31 = vld [vmem:[#allocation13] sm:$0xff]  }
 0x284   :  { %1502 = vmatpush1.bf16.msra.mxu0 %v2311_v32 }
 0x285   :  { %1503 = vmatprep.subr.bf16.mxu0 %v2316_v33  ;;  %v2340_v33 = vld [vmem:[#allocation13 + $0x8] sm:$0xff]  }
 0x288   :  { %1504 = vmatpush1.bf16.msra.mxu0 %v2314_v34  ;;  %v2343_v34 = vld [vmem:[#allocation13 + $0x20] sm:$0xff]  }
 0x289   :  { %1505 = vmatprep.subr.bf16.mxu0 %v2319_v35  ;;  %v2344_v35 = vld [vmem:[#allocation13 + $0x28] sm:$0xff]  }
 0x28c   :  { %1506 = vmatpush1.bf16.msra.mxu0 %v2317_v36  ;;  %v2345_v36 = vld [vmem:[#allocation13 + $0x30] sm:$0xff]  }
 0x28d   :  { %1507 = vmatprep.subr.bf16.mxu0 %v2322_v37  ;;  %v2346_v37 = vld [vmem:[#allocation13 + $0x38] sm:$0xff]  }
 0x290   :  { %1508 = vmatpush1.bf16.msra.mxu0 %v2320_v38 }
 0x326   :  { %v1216_v56 = vpop.f32.mrb[8].mxu0  ;;  %v1257_v57 = vpop.f32.mrb[8].mxu1 }
 0x327   :  { %v1217_v58 = vadd.f32 %v1216_v56, %v845_v52  ;;  %v1258_v59 = vadd.f32 %v1257_v57, %v853_v53  ;;  %v1218_v60 = vpop.f32.mrb[9].mxu0  ;;  %v1259_v61 = vpop.f32.mrb[9].mxu1 }
 0x328   :  { %v1219_v62 = vadd.f32 %v1218_v60, %v849_v54  ;;  %v1260_v63 = vadd.f32 %v1259_v61, %v857_v55  ;;  %v1220_v0 = vpop.f32.mrb[10].mxu0  ;;  %v1261_v1 = vpop.f32.mrb[10].mxu1 }
 0x329   :  { %v1264_v2 = vmax.f32 %v1217_v58, 0.0  ;;  %v1266_v3 = vmax.f32 %v1258_v59, 0.0  ;;  %v1221_v4 = vpop.f32.mrb[11].mxu0  ;;  %v1262_v5 = vpop.f32.mrb[11].mxu1 }
 0x32a   :  { %v1265_v6 = vmax.f32 %v1219_v62, 0.0  ;;  %v1267_v12 = vmax.f32 %v1260_v63, 0.0 }
 0x32b   :  { %v1268_v7 = vmax.f32 %v1264_v2, %v1266_v3 }
 0x32c   :  { %v1269_v8 = vmax.f32 %v1265_v6, %v1267_v12 }
 0x32d   :  { %v1302_v15 = vpack.c.bf16 %v1268_v7, %v1268_v7 }
 0x32e   :  { %v1303_v9 = vpack.c.bf16 %v1269_v8, %v1269_v8 }
 0x330   :  { %1509 = vmatprep.mubr.bf16.mxu0 %v1303_v9 }
 0x331   :  { %1510 = vmatmul.mubr.bf16.vlgmr.msra.gmra.mrb[12].mxu0 %v1302_v15 }
 0x404   :  { %v1511_v22 = vpop.f32.mrb[12].mxu0 }
 0x405   :  { %v1512_v23 = vadd.f32 %v1511_v22, %v1310_v20  ;;  %v1513_v24 = vpop.f32.mrb[13].mxu0 }
 0x406   :  { %v1514_v25 = vadd.f32 %v1513_v24, %v1314_v21  ;;  %v1515_v26 = vpop.f32.mrb[14].mxu0 }
 0x407   :  { %v1518_v27 = vmax.f32 %v1512_v23, 0.0  ;;  %v1516_v28 = vpop.f32.mrb[15].mxu0 }
 0x408   :  { %v1519_v29 = vmax.f32 %v1514_v25, 0.0 }
 0x409   :  { %v1552_v32 = vpack.c.bf16 %v1518_v27, %v1518_v27 }
 0x40a   :  { %v1553_v30 = vpack.c.bf16 %v1519_v29, %v1519_v29 }
 0x40c   :  { %1683 = vmatprep.mubr.bf16.mxu1 %v1553_v30 }
 0x40d   :  { %1684 = vmatmul.mubr.bf16.vlgmr.msra.gmra.mrb[12].mxu1 %v1552_v32 }
 0x40e   :  { %2040 = vmatpush3.bf16.msra.mxu1 %v2339_v31  ;;  %2055 = vmatprep.mubr.msk.bf16.mxu1 %vm2573_vm1, %v2572_v18 }
 0x40f   :  { %2041 = vmatprep.subr.bf16.mxu1 %v2572_v18 }
 0x412   :  { %2042 = vmatpush3.bf16.msra.mxu1 %v2340_v33 }
 0x413   :  { %2043 = vmatprep.subr.bf16.mxu1 %v2572_v18 }
 0x416   :  { %2044 = vmatpush3.bf16.msra.mxu1 %v2341_v11 }
 0x417   :  { %2045 = vmatprep.subr.bf16.mxu1 %v2572_v18 }
 0x41a   :  { %2046 = vmatpush3.bf16.msra.mxu1 %v2342_v14 }
 0x41b   :  { %2047 = vmatprep.subr.bf16.mxu1 %v2572_v18 }
 0x41e   :  { %2048 = vmatpush3.bf16.msra.mxu1 %v2343_v34 }
 0x41f   :  { %2049 = vmatprep.subr.bf16.mxu1 %v2572_v18 }
 0x422   :  { %2050 = vmatpush3.bf16.msra.mxu1 %v2344_v35 }
 0x423   :  { %2051 = vmatprep.subr.bf16.mxu1 %v2572_v18 }
 0x426   :  { %2052 = vmatpush3.bf16.msra.mxu1 %v2345_v36 }
 0x427   :  { %2053 = vmatprep.subr.bf16.mxu1 %v2572_v18 }
 0x42a   :  { %2054 = vmatpush3.bf16.msra.mxu1 %v2346_v37 }
 0x4e0   :  { %v2024_v38 = vpop.f32.mrb[12].mxu1 }
 0x4e1   :  { %v2025_v40 = vpop.f32.mrb[13].mxu1 }
 0x4e2   :  { %v2026_v41 = vadd.f32 %v2025_v40, %v2024_v38  ;;  %v2027_v42 = vpop.f32.mrb[14].mxu1 }
 0x4e3   :  { %v2028_v43 = vpop.f32.mrb[15].mxu1 }
 0x4e4   :  { %v1686_v44 = vadd.f32 %v2026_v41, %v1554_v39 }
 0x4e6   :  { %v1691_v45 = vmax.f32 %v1686_v44, 0.0 }
 0x4e8   :  { %v1708_v46 = vpack.c.bf16 %v1691_v45, %v1691_v45 }
 0x4ea   :  { %2056 = vmatmul.mubr.bf16.vlgmr.msra.gmra.mrb[16].mxu1 %v1708_v46 }
 0x5bd   :  { %v1792_v48 = vpop.f32.mrb[16].mxu1 }
 0x5be   :  { %v1793_v49 = vadd.f32 %v1792_v48, %v1709_v47  ;;  %v2057_v50 = vpop.f32.mrb[17].mxu1 }
 0x5bf   :  { %v1795_v51 = vpop.f32.mrb[18].mxu1 }
 0x5c0   :  { %1798 = vst [vmem:[#allocation16] sm:$0xff] %v1793_v49  ;;  %v2058_v52 = vpop.f32.mrb[19].mxu1 }
 0x5c1   :  { %2534 = shalt.err (!%p2531_p12)
}
 0x5c2   :  { %s2535_s27 = scalar_lea.hbm %s2773_s8, 128 }
 0x5c3   :  { %p2536_p13 = scmp.ne.s32.totalorder %s2773_s8, %s2535_s27  ;;  %p2539_p0 = scmp.lt.u32.totalorder %s2535_s27, %s2773_s8 }
 0x5c5   :  { %p2541_p1 = pnand %p2539_p0, %p2536_p13 }
 0x5c7   :  { %2544 = shalt.err (!%p2541_p1)
}
 0x5c8   :  { %1808 = dma.vmem_to_hbm [thread:$0]  %s1806_s20, 128, %s2773_s8, [#allocation4]  }
 0x5c9   :  { %2555 = dma.done.wait [#allocation4], 128  }
 0x5ca   :  { %2556 = vsyncadd [#allocation4], 4294967168 }
 0x5cb   :  { %1812 = vsyncpa [#allocation3], 1 }
 0x5cc   :  { %1813 = vsyncpa [#allocation6], 1 }
 0x5cd   :  { %1814 = vsyncpa [#allocation9], 1 }
 0x5ce   :  { %1815 = vsyncpa [#allocation12], 1 }
 0x5cf   :  { %1816 = vsyncpa [#allocation15], 1 }
 0x5d0   :  { %1817 = vsyncpa [#allocation4], 1 }

</bundles_post_ra>
